<compile_context>
chip_gen: v5e
topology: v5e:2x2
jax: 0.10.0
libtpu: 0.0.40
codegen_flags: <defaults>
</compile_context>

<pallas_src>
import functools

import jax
import jax.numpy as jnp
import numpy as np
from jax import lax
from jax.experimental import pallas as pl
from jax.experimental.pallas import tpu as pltpu


def _round_up(x: int, m: int) -> int:
    return ((x + m - 1) // m) * m


def _corner_loss_kernel(x_ref, out_ref, acc_ref, *, half_pad, chunk, nchunks):
    """Grid: (core, sample_block) = ("parallel", "arbitrary").

    x_ref   : [128, nb] f32 — rows 0:64 = p, rows 64:128 = p_gt; within each,
              rows k*8:(k+1)*8 hold parameter k as a dense (8, nb) tile.
    out_ref : [8, 128] f32 — per-core lane-wise partial sums (written once).
    acc_ref : [8, chunk] f32 VMEM accumulator (persists across sample blocks).
    """
    i = pl.program_id(1)

    @pl.when(i == 0)
    def _init():
        acc_ref[...] = jnp.zeros_like(acc_ref)

    c = half_pad  # static scalar immediate

    def corners(base, start):
        # Load the 8 parameters of one tensor for this lane sub-chunk.
        h = [x_ref[base + k * 8: base + (k + 1) * 8, pl.ds(start, chunk)]
             for k in range(8)]
        # CSE across corners: corner coords are only +-c, so compute the six
        # products once and build every corner with sign-folded adds.
        a0 = (h[0] + 1.0) * c
        b0 = h[1] * c
        a1 = h[3] * c
        b1 = (h[4] + 1.0) * c
        a2 = h[6] * c
        b2 = h[7] * c
        sx, dx = a0 + b0, a0 - b0
        sy, dy = a1 + b1, a1 - b1
        sz, dz = a2 + b2, a2 - b2
        out = []
        # Corner order: (-c,-c), (+c,-c), (+c,+c), (-c,+c).
        for sign, tx, ty, tz in ((-1.0, sx, sy, sz), (1.0, dx, dy, dz),
                                 (1.0, sx, sy, sz), (-1.0, dx, dy, dz)):
            if sign > 0:
                wx, wy, wz = h[2] + tx, h[5] + ty, 1.0 + tz
            else:
                wx, wy, wz = h[2] - tx, h[5] - ty, 1.0 - tz
            # EUP approx reciprocal + one Newton step (~f32 accurate); keeps
            # the divide off the VALU path.  Do NOT drop the NR step.
            r = pl.reciprocal(wz, approx=True)
            inv = r * (2.0 - wz * r)
            out.append((wx * inv, wy * inv))
        return out

    def chunk_body(ci, partial):
        start = pl.multiple_of(ci * chunk, chunk)
        pc = corners(0, start)    # predicted homography, 4 warped corners
        gc = corners(64, start)   # ground-truth homography, 4 warped corners
        d = None
        for (px, py), (gx, gy) in zip(pc, gc):
            dd = (px - gx) ** 2 + (py - gy) ** 2
            d = dd if d is None else d + dd
        return partial + d

    partial = lax.fori_loop(0, nchunks, chunk_body,
                            jnp.zeros((8, chunk), jnp.float32),
                            unroll=(nchunks <= 8))
    acc_ref[...] += partial

    @pl.when(i == pl.num_programs(1) - 1)
    def _finalize():
        acc = acc_ref[...]
        r = acc[:, 0:128]
        for s in range(128, chunk, 128):
            r = r + acc[:, s:s + 128]
        out_ref[...] = r


def _pack_params(p, p_gt, n, n_pad, nb):
    """Fuse p / p_gt into one pre-blocked [n_blocks, 128, nb] f32 slab.

    Padding samples are zeros -> identity homographies for BOTH tensors, so
    they contribute exactly zero to the loss (approx-reciprocal error cancels
    bit-exactly).  Preserve that invariant if this layout changes.
    """
    L = n_pad // 8

    def one(x):
        x2 = x.reshape(n, 8).astype(jnp.float32).T          # [8, N]
        x2 = jnp.pad(x2, ((0, 0), (0, n_pad - n)))          # zero params -> H = I
        return x2.reshape(8, 8, L).reshape(64, L)            # rows k*8+s = param k

    fused = jnp.concatenate([one(p), one(p_gt)], axis=0)     # [128, L]
    nblk = L // nb
    return fused.reshape(128, nblk, nb).transpose(1, 0, 2)   # [nblk, 128, nb]


def _corner_loss_xla(p, p_gt, training_sz_pad):
    """Fused XLA fast path for small N (repack + kernel launch not worth it)."""
    c = 0.5 * float(training_sz_pad)
    n = p.shape[0]
    ph = p.reshape(n, 8).astype(jnp.float32)
    gh = p_gt.reshape(n, 8).astype(jnp.float32)
    cx = jnp.array([-c, c, c, -c], jnp.float32)
    cy = jnp.array([-c, -c, c, c], jnp.float32)

    def warp(h):
        wx = (h[:, 0:1] + 1.0) * cx + h[:, 1:2] * cy + h[:, 2:3]
        wy = h[:, 3:4] * cx + (h[:, 4:5] + 1.0) * cy + h[:, 5:6]
        wz = h[:, 6:7] * cx + h[:, 7:8] * cy + 1.0
        return wx / wz, wy / wz

    px, py = warp(ph)
    gx, gy = warp(gh)
    return jnp.sum((px - gx) ** 2 + (py - gy) ** 2)


def corner_loss(p, p_gt, training_sz_pad, *, block_n=32768, min_pallas_n=65536):
    """p, p_gt: [N, 8, 1] (or [N, 8]) arrays.  Returns the scalar f32 loss."""
    n = p.shape[0]
    if n < min_pallas_n:
        return _corner_loss_xla(p, p_gt, training_sz_pad)

    chunk = 256                      # lanes per in-register compute sub-chunk
    # Lanes per DMA block: multiple of `chunk`, capped at 32768 so the single
    # fused input (2 pipeline buffers x 128*nb*4 B) stays under ~40 MiB and
    # fits every generation, including v7x's 64 MiB physical VMEM.
    nb = _round_up(min(int(block_n), 32768, pl.cdiv(n, 8)), chunk)
    samples_per_block = 8 * nb
    # Pad to an even number of sample blocks for the 2-way core split.
    n_pad = _round_up(n, 2 * samples_per_block)
    total_blocks = n_pad // samples_per_block
    bpc = total_blocks // 2          # sample blocks per TensorCore
    nchunks = nb // chunk

    packed = _pack_params(p, p_gt, n, n_pad, nb)   # [total_blocks, 128, nb]

    block_bytes = 128 * nb * 4
    vmem_limit = int(min(48 << 20, max(32 << 20, 2 * block_bytes + (8 << 20))))

    kernel = functools.partial(_corner_loss_kernel,
                               half_pad=0.5 * float(training_sz_pad),
                               chunk=chunk, nchunks=nchunks)

    out = pl.pallas_call(
        kernel,
        out_shape=jax.ShapeDtypeStruct((2 * 8, 128), jnp.float32),
        grid_spec=pltpu.PrefetchScalarGridSpec(
            num_scalar_prefetch=0,
            grid=(2, bpc),
            in_specs=[
                # One fused, pre-blocked input: each grid step is a single
                # fully contiguous 128*nb*4-byte DMA.
                pl.BlockSpec((None, 128, nb),
                             lambda c, i: (c * bpc + i, 0, 0)),
            ],
            out_specs=pl.BlockSpec((8, 128), lambda c, i: (c, 0)),
            scratch_shapes=[pltpu.VMEM((8, chunk), jnp.float32)],
        ),
        compiler_params=pltpu.CompilerParams(
            # Leading axis "parallel": on v7x the two TensorCores each reduce
            # half of the sample blocks; sequential (and harmless) on v5e/v6e.
            dimension_semantics=("parallel", "arbitrary"),
            vmem_limit_bytes=vmem_limit,
        ),
        cost_estimate=pl.CostEstimate(
            flops=120 * n_pad,
            transcendentals=8 * n_pad,
            bytes_accessed=64 * n_pad + 2 * 8 * 128 * 4,
        ),
    )(packed)
    return jnp.sum(out)


def corner_loss_ref(p, p_gt, training_sz_pad):
    """Plain-JAX reference mirroring the PyTorch forward."""
    n = p.shape[0]
    p = p.reshape(n, 8, 1).astype(jnp.float32)
    p_gt = p_gt.reshape(n, 8, 1).astype(jnp.float32)
    z = jnp.zeros((n, 1, 1), jnp.float32)
    Hp = jnp.concatenate([p, z], axis=1).reshape(n, 3, 3) + jnp.eye(3, dtype=jnp.float32)
    Hg = jnp.concatenate([p_gt, z], axis=1).reshape(n, 3, 3) + jnp.eye(3, dtype=jnp.float32)
    base = jnp.array(
        [[-0.5, 0.5, 0.5, -0.5],
         [-0.5, -0.5, 0.5, 0.5],
         [1.0, 1.0, 1.0, 1.0]], dtype=jnp.float32)
    corners = base.at[:2, :].multiply(float(training_sz_pad))
    corners = jnp.broadcast_to(corners, (n, 3, 4))
    wp = jnp.einsum('nij,njk->nik', Hp, corners)
    wg = jnp.einsum('nij,njk->nik', Hg, corners)
    wp2 = wp[:, :2, :] / wp[:, 2:3, :]
    wg2 = wg[:, :2, :] / wg[:, 2:3, :]
    return jnp.sum((wp2 - wg2) ** 2)


if __name__ == "__main__":
    training_sz_pad = 16.0
    key = jax.random.PRNGKey(0)
    k1, k2, k3, k4 = jax.random.split(key, 4)

    # Small case matching the module interface ([N, 8, 1]); force the Pallas
    # path (the default min_pallas_n would route it to the XLA fast path).
    N = 2
    p = 0.05 * jax.random.normal(k1, (N, 8, 1), dtype=jnp.float32)
    p_gt = 0.05 * jax.random.normal(k2, (N, 8, 1), dtype=jnp.float32)
    loss = jax.block_until_ready(corner_loss(p, p_gt, training_sz_pad,
                                             min_pallas_n=0))
    ref = jax.block_until_ready(corner_loss_ref(p, p_gt, training_sz_pad))
    np.testing.assert_allclose(np.asarray(loss), np.asarray(ref),
                               rtol=1e-4, atol=1e-4)

    # Larger case exercising multi-block accumulation on BOTH core partitions
    # (grid = (2, 3) at block_n=256) plus zero-padding of the ragged tail.
    N2 = 10000
    pb = 0.01 * jax.random.normal(k3, (N2, 8, 1), dtype=jnp.float32)
    gb = 0.01 * jax.random.normal(k4, (N2, 8, 1), dtype=jnp.float32)
    loss2 = jax.block_until_ready(corner_loss(pb, gb, training_sz_pad,
                                              block_n=256, min_pallas_n=0))
    ref2 = jax.block_until_ready(corner_loss_ref(pb, gb, training_sz_pad))
    np.testing.assert_allclose(np.asarray(loss2), np.asarray(ref2),
                               rtol=1e-4, atol=1e-4)

    # Small-N XLA fast path (default threshold skips the kernel).
    loss3 = jax.block_until_ready(corner_loss(p, p_gt, training_sz_pad))
    np.testing.assert_allclose(np.asarray(loss3), np.asarray(ref),
                               rtol=1e-4, atol=1e-4)

    print("KERNEL_OK")
</pallas_src>

<mosaic_0001>
module attributes {stable_mosaic.version = 11 : i64} {
  func.func @_corner_loss_kernel(%arg0: i32, %arg1: i32, %arg2: memref<1x128x256xf32, #tpu.memory_space<vmem>>, %arg3: memref<8x128xf32, #tpu.memory_space<vmem>>, %arg4: memref<8x256xf32, #tpu.memory_space<vmem>>) attributes {dimension_semantics = [#tpu.dimension_semantics<parallel>, #tpu.dimension_semantics<arbitrary>], iteration_bounds = array<i64: 2, 1>, scalar_prefetch = 0 : i64, scratch_operands = 1 : i64, tpu.core_type = #tpu.core_type<tc>, window_params = [{transform_indices = @transform_0, window_bounds = array<i64: 1, 128, 256>}, {transform_indices = @transform_1, window_bounds = array<i64: 8, 128>}]} {
    %c0_i32 = arith.constant 0 : i32
    %0 = arith.cmpi eq, %arg1, %c0_i32 : i32
    %1 = arith.extui %0 : i1 to i32
    %c0_i32_0 = arith.constant 0 : i32
    %2 = arith.cmpi ne, %1, %c0_i32_0 : i32
    scf.if %2 {
      %cst_56 = arith.constant 0.000000e+00 : f32
      %216 = vector.broadcast %cst_56 : f32 to vector<8x256xf32>
      %c0_57 = arith.constant 0 : index
      %c0_58 = arith.constant 0 : index
      %217 = vector.load %arg4[%c0_57, %c0_58] : memref<8x256xf32, #tpu.memory_space<vmem>>, vector<8x256xf32>
      tpu.vector_store %arg4[%c0_57, %c0_58], %216 {strides = array<i32>} : memref<8x256xf32, #tpu.memory_space<vmem>>, vector<8x256xf32>,
    } else {
    }
    %cst = arith.constant 0.000000e+00 : f32
    %3 = vector.broadcast %cst : f32 to vector<8x256xf32>
    %c0_i32_1 = arith.constant 0 : i32
    %c256_i32 = arith.constant 256 : i32
    %4 = arith.muli %c0_i32_1, %c256_i32 : i32
    %5 = tpu.assume_multiple %4, 256 : i32
    %c0 = arith.constant 0 : index
    %c0_2 = arith.constant 0 : index
    %6 = arith.index_cast %5 : i32 to index
    %7 = vector.load %arg2[%c0, %c0_2, %6] : memref<1x128x256xf32, #tpu.memory_space<vmem>>, vector<1x8x256xf32>
    %8 = vector.shape_cast %7 : vector<1x8x256xf32> to vector<8x256xf32>
    %c0_3 = arith.constant 0 : index
    %c8 = arith.constant 8 : index
    %9 = arith.index_cast %5 : i32 to index
    %10 = vector.load %arg2[%c0_3, %c8, %9] : memref<1x128x256xf32, #tpu.memory_space<vmem>>, vector<1x8x256xf32>
    %11 = vector.shape_cast %10 : vector<1x8x256xf32> to vector<8x256xf32>
    %c0_4 = arith.constant 0 : index
    %c16 = arith.constant 16 : index
    %12 = arith.index_cast %5 : i32 to index
    %13 = vector.load %arg2[%c0_4, %c16, %12] : memref<1x128x256xf32, #tpu.memory_space<vmem>>, vector<1x8x256xf32>
    %14 = vector.shape_cast %13 : vector<1x8x256xf32> to vector<8x256xf32>
    %c0_5 = arith.constant 0 : index
    %c24 = arith.constant 24 : index
    %15 = arith.index_cast %5 : i32 to index
    %16 = vector.load %arg2[%c0_5, %c24, %15] : memref<1x128x256xf32, #tpu.memory_space<vmem>>, vector<1x8x256xf32>
    %17 = vector.shape_cast %16 : vector<1x8x256xf32> to vector<8x256xf32>
    %c0_6 = arith.constant 0 : index
    %c32 = arith.constant 32 : index
    %18 = arith.index_cast %5 : i32 to index
    %19 = vector.load %arg2[%c0_6, %c32, %18] : memref<1x128x256xf32, #tpu.memory_space<vmem>>, vector<1x8x256xf32>
    %20 = vector.shape_cast %19 : vector<1x8x256xf32> to vector<8x256xf32>
    %c0_7 = arith.constant 0 : index
    %c40 = arith.constant 40 : index
    %21 = arith.index_cast %5 : i32 to index
    %22 = vector.load %arg2[%c0_7, %c40, %21] : memref<1x128x256xf32, #tpu.memory_space<vmem>>, vector<1x8x256xf32>
    %23 = vector.shape_cast %22 : vector<1x8x256xf32> to vector<8x256xf32>
    %c0_8 = arith.constant 0 : index
    %c48 = arith.constant 48 : index
    %24 = arith.index_cast %5 : i32 to index
    %25 = vector.load %arg2[%c0_8, %c48, %24] : memref<1x128x256xf32, #tpu.memory_space<vmem>>, vector<1x8x256xf32>
    %26 = vector.shape_cast %25 : vector<1x8x256xf32> to vector<8x256xf32>
    %c0_9 = arith.constant 0 : index
    %c56 = arith.constant 56 : index
    %27 = arith.index_cast %5 : i32 to index
    %28 = vector.load %arg2[%c0_9, %c56, %27] : memref<1x128x256xf32, #tpu.memory_space<vmem>>, vector<1x8x256xf32>
    %29 = vector.shape_cast %28 : vector<1x8x256xf32> to vector<8x256xf32>
    %cst_10 = arith.constant 1.000000e+00 : f32
    %30 = vector.broadcast %cst_10 : f32 to vector<8x256xf32>
    %31 = arith.addf %8, %30 : vector<8x256xf32>
    %cst_11 = arith.constant 8.000000e+00 : f32
    %32 = vector.broadcast %cst_11 : f32 to vector<8x256xf32>
    %33 = arith.mulf %31, %32 : vector<8x256xf32>
    %cst_12 = arith.constant 8.000000e+00 : f32
    %34 = vector.broadcast %cst_12 : f32 to vector<8x256xf32>
    %35 = arith.mulf %11, %34 : vector<8x256xf32>
    %cst_13 = arith.constant 8.000000e+00 : f32
    %36 = vector.broadcast %cst_13 : f32 to vector<8x256xf32>
    %37 = arith.mulf %17, %36 : vector<8x256xf32>
    %cst_14 = arith.constant 1.000000e+00 : f32
    %38 = vector.broadcast %cst_14 : f32 to vector<8x256xf32>
    %39 = arith.addf %20, %38 : vector<8x256xf32>
    %cst_15 = arith.constant 8.000000e+00 : f32
    %40 = vector.broadcast %cst_15 : f32 to vector<8x256xf32>
    %41 = arith.mulf %39, %40 : vector<8x256xf32>
    %cst_16 = arith.constant 8.000000e+00 : f32
    %42 = vector.broadcast %cst_16 : f32 to vector<8x256xf32>
    %43 = arith.mulf %26, %42 : vector<8x256xf32>
    %cst_17 = arith.constant 8.000000e+00 : f32
    %44 = vector.broadcast %cst_17 : f32 to vector<8x256xf32>
    %45 = arith.mulf %29, %44 : vector<8x256xf32>
    %46 = arith.addf %33, %35 : vector<8x256xf32>
    %47 = arith.subf %33, %35 : vector<8x256xf32>
    %48 = arith.addf %37, %41 : vector<8x256xf32>
    %49 = arith.subf %37, %41 : vector<8x256xf32>
    %50 = arith.addf %43, %45 : vector<8x256xf32>
    %51 = arith.subf %43, %45 : vector<8x256xf32>
    %52 = arith.subf %14, %46 : vector<8x256xf32>
    %53 = arith.subf %23, %48 : vector<8x256xf32>
    %cst_18 = arith.constant 1.000000e+00 : f32
    %54 = vector.broadcast %cst_18 : f32 to vector<8x256xf32>
    %55 = arith.subf %54, %50 : vector<8x256xf32>
    %56 = tpu.reciprocal %55 {approx = true} : vector<8x256xf32> -> vector<8x256xf32>
    %57 = arith.mulf %55, %56 : vector<8x256xf32>
    %cst_19 = arith.constant 2.000000e+00 : f32
    %58 = vector.broadcast %cst_19 : f32 to vector<8x256xf32>
    %59 = arith.subf %58, %57 : vector<8x256xf32>
    %60 = arith.mulf %56, %59 : vector<8x256xf32>
    %61 = arith.mulf %52, %60 : vector<8x256xf32>
    %62 = arith.mulf %53, %60 : vector<8x256xf32>
    %63 = arith.addf %14, %47 : vector<8x256xf32>
    %64 = arith.addf %23, %49 : vector<8x256xf32>
    %cst_20 = arith.constant 1.000000e+00 : f32
    %65 = vector.broadcast %cst_20 : f32 to vector<8x256xf32>
    %66 = arith.addf %65, %51 : vector<8x256xf32>
    %67 = tpu.reciprocal %66 {approx = true} : vector<8x256xf32> -> vector<8x256xf32>
    %68 = arith.mulf %66, %67 : vector<8x256xf32>
    %cst_21 = arith.constant 2.000000e+00 : f32
    %69 = vector.broadcast %cst_21 : f32 to vector<8x256xf32>
    %70 = arith.subf %69, %68 : vector<8x256xf32>
    %71 = arith.mulf %67, %70 : vector<8x256xf32>
    %72 = arith.mulf %63, %71 : vector<8x256xf32>
    %73 = arith.mulf %64, %71 : vector<8x256xf32>
    %74 = arith.addf %14, %46 : vector<8x256xf32>
    %75 = arith.addf %23, %48 : vector<8x256xf32>
    %cst_22 = arith.constant 1.000000e+00 : f32
    %76 = vector.broadcast %cst_22 : f32 to vector<8x256xf32>
    %77 = arith.addf %76, %50 : vector<8x256xf32>
    %78 = tpu.reciprocal %77 {approx = true} : vector<8x256xf32> -> vector<8x256xf32>
    %79 = arith.mulf %77, %78 : vector<8x256xf32>
    %cst_23 = arith.constant 2.000000e+00 : f32
    %80 = vector.broadcast %cst_23 : f32 to vector<8x256xf32>
    %81 = arith.subf %80, %79 : vector<8x256xf32>
    %82 = arith.mulf %78, %81 : vector<8x256xf32>
    %83 = arith.mulf %74, %82 : vector<8x256xf32>
    %84 = arith.mulf %75, %82 : vector<8x256xf32>
    %85 = arith.subf %14, %47 : vector<8x256xf32>
    %86 = arith.subf %23, %49 : vector<8x256xf32>
    %cst_24 = arith.constant 1.000000e+00 : f32
    %87 = vector.broadcast %cst_24 : f32 to vector<8x256xf32>
    %88 = arith.subf %87, %51 : vector<8x256xf32>
    %89 = tpu.reciprocal %88 {approx = true} : vector<8x256xf32> -> vector<8x256xf32>
    %90 = arith.mulf %88, %89 : vector<8x256xf32>
    %cst_25 = arith.constant 2.000000e+00 : f32
    %91 = vector.broadcast %cst_25 : f32 to vector<8x256xf32>
    %92 = arith.subf %91, %90 : vector<8x256xf32>
    %93 = arith.mulf %89, %92 : vector<8x256xf32>
    %94 = arith.mulf %85, %93 : vector<8x256xf32>
    %95 = arith.mulf %86, %93 : vector<8x256xf32>
    %c0_26 = arith.constant 0 : index
    %c64 = arith.constant 64 : index
    %96 = arith.index_cast %5 : i32 to index
    %97 = vector.load %arg2[%c0_26, %c64, %96] : memref<1x128x256xf32, #tpu.memory_space<vmem>>, vector<1x8x256xf32>
    %98 = vector.shape_cast %97 : vector<1x8x256xf32> to vector<8x256xf32>
    %c0_27 = arith.constant 0 : index
    %c72 = arith.constant 72 : index
    %99 = arith.index_cast %5 : i32 to index
    %100 = vector.load %arg2[%c0_27, %c72, %99] : memref<1x128x256xf32, #tpu.memory_space<vmem>>, vector<1x8x256xf32>
    %101 = vector.shape_cast %100 : vector<1x8x256xf32> to vector<8x256xf32>
    %c0_28 = arith.constant 0 : index
    %c80 = arith.constant 80 : index
    %102 = arith.index_cast %5 : i32 to index
    %103 = vector.load %arg2[%c0_28, %c80, %102] : memref<1x128x256xf32, #tpu.memory_space<vmem>>, vector<1x8x256xf32>
    %104 = vector.shape_cast %103 : vector<1x8x256xf32> to vector<8x256xf32>
    %c0_29 = arith.constant 0 : index
    %c88 = arith.constant 88 : index
    %105 = arith.index_cast %5 : i32 to index
    %106 = vector.load %arg2[%c0_29, %c88, %105] : memref<1x128x256xf32, #tpu.memory_space<vmem>>, vector<1x8x256xf32>
    %107 = vector.shape_cast %106 : vector<1x8x256xf32> to vector<8x256xf32>
    %c0_30 = arith.constant 0 : index
    %c96 = arith.constant 96 : index
    %108 = arith.index_cast %5 : i32 to index
    %109 = vector.load %arg2[%c0_30, %c96, %108] : memref<1x128x256xf32, #tpu.memory_space<vmem>>, vector<1x8x256xf32>
    %110 = vector.shape_cast %109 : vector<1x8x256xf32> to vector<8x256xf32>
    %c0_31 = arith.constant 0 : index
    %c104 = arith.constant 104 : index
    %111 = arith.index_cast %5 : i32 to index
    %112 = vector.load %arg2[%c0_31, %c104, %111] : memref<1x128x256xf32, #tpu.memory_space<vmem>>, vector<1x8x256xf32>
    %113 = vector.shape_cast %112 : vector<1x8x256xf32> to vector<8x256xf32>
    %c0_32 = arith.constant 0 : index
    %c112 = arith.constant 112 : index
    %114 = arith.index_cast %5 : i32 to index
    %115 = vector.load %arg2[%c0_32, %c112, %114] : memref<1x128x256xf32, #tpu.memory_space<vmem>>, vector<1x8x256xf32>
    %116 = vector.shape_cast %115 : vector<1x8x256xf32> to vector<8x256xf32>
    %c0_33 = arith.constant 0 : index
    %c120 = arith.constant 120 : index
    %117 = arith.index_cast %5 : i32 to index
    %118 = vector.load %arg2[%c0_33, %c120, %117] : memref<1x128x256xf32, #tpu.memory_space<vmem>>, vector<1x8x256xf32>
    %119 = vector.shape_cast %118 : vector<1x8x256xf32> to vector<8x256xf32>
    %cst_34 = arith.constant 1.000000e+00 : f32
    %120 = vector.broadcast %cst_34 : f32 to vector<8x256xf32>
    %121 = arith.addf %98, %120 : vector<8x256xf32>
    %cst_35 = arith.constant 8.000000e+00 : f32
    %122 = vector.broadcast %cst_35 : f32 to vector<8x256xf32>
    %123 = arith.mulf %121, %122 : vector<8x256xf32>
    %cst_36 = arith.constant 8.000000e+00 : f32
    %124 = vector.broadcast %cst_36 : f32 to vector<8x256xf32>
    %125 = arith.mulf %101, %124 : vector<8x256xf32>
    %cst_37 = arith.constant 8.000000e+00 : f32
    %126 = vector.broadcast %cst_37 : f32 to vector<8x256xf32>
    %127 = arith.mulf %107, %126 : vector<8x256xf32>
    %cst_38 = arith.constant 1.000000e+00 : f32
    %128 = vector.broadcast %cst_38 : f32 to vector<8x256xf32>
    %129 = arith.addf %110, %128 : vector<8x256xf32>
    %cst_39 = arith.constant 8.000000e+00 : f32
    %130 = vector.broadcast %cst_39 : f32 to vector<8x256xf32>
    %131 = arith.mulf %129, %130 : vector<8x256xf32>
    %cst_40 = arith.constant 8.000000e+00 : f32
    %132 = vector.broadcast %cst_40 : f32 to vector<8x256xf32>
    %133 = arith.mulf %116, %132 : vector<8x256xf32>
    %cst_41 = arith.constant 8.000000e+00 : f32
    %134 = vector.broadcast %cst_41 : f32 to vector<8x256xf32>
    %135 = arith.mulf %119, %134 : vector<8x256xf32>
    %136 = arith.addf %123, %125 : vector<8x256xf32>
    %137 = arith.subf %123, %125 : vector<8x256xf32>
    %138 = arith.addf %127, %131 : vector<8x256xf32>
    %139 = arith.subf %127, %131 : vector<8x256xf32>
    %140 = arith.addf %133, %135 : vector<8x256xf32>
    %141 = arith.subf %133, %135 : vector<8x256xf32>
    %142 = arith.subf %104, %136 : vector<8x256xf32>
    %143 = arith.subf %113, %138 : vector<8x256xf32>
    %cst_42 = arith.constant 1.000000e+00 : f32
    %144 = vector.broadcast %cst_42 : f32 to vector<8x256xf32>
    %145 = arith.subf %144, %140 : vector<8x256xf32>
    %146 = tpu.reciprocal %145 {approx = true} : vector<8x256xf32> -> vector<8x256xf32>
    %147 = arith.mulf %145, %146 : vector<8x256xf32>
    %cst_43 = arith.constant 2.000000e+00 : f32
    %148 = vector.broadcast %cst_43 : f32 to vector<8x256xf32>
    %149 = arith.subf %148, %147 : vector<8x256xf32>
    %150 = arith.mulf %146, %149 : vector<8x256xf32>
    %151 = arith.mulf %142, %150 : vector<8x256xf32>
    %152 = arith.mulf %143, %150 : vector<8x256xf32>
    %153 = arith.addf %104, %137 : vector<8x256xf32>
    %154 = arith.addf %113, %139 : vector<8x256xf32>
    %cst_44 = arith.constant 1.000000e+00 : f32
    %155 = vector.broadcast %cst_44 : f32 to vector<8x256xf32>
    %156 = arith.addf %155, %141 : vector<8x256xf32>
    %157 = tpu.reciprocal %156 {approx = true} : vector<8x256xf32> -> vector<8x256xf32>
    %158 = arith.mulf %156, %157 : vector<8x256xf32>
    %cst_45 = arith.constant 2.000000e+00 : f32
    %159 = vector.broadcast %cst_45 : f32 to vector<8x256xf32>
    %160 = arith.subf %159, %158 : vector<8x256xf32>
    %161 = arith.mulf %157, %160 : vector<8x256xf32>
    %162 = arith.mulf %153, %161 : vector<8x256xf32>
    %163 = arith.mulf %154, %161 : vector<8x256xf32>
    %164 = arith.addf %104, %136 : vector<8x256xf32>
    %165 = arith.addf %113, %138 : vector<8x256xf32>
    %cst_46 = arith.constant 1.000000e+00 : f32
    %166 = vector.broadcast %cst_46 : f32 to vector<8x256xf32>
    %167 = arith.addf %166, %140 : vector<8x256xf32>
    %168 = tpu.reciprocal %167 {approx = true} : vector<8x256xf32> -> vector<8x256xf32>
    %169 = arith.mulf %167, %168 : vector<8x256xf32>
    %cst_47 = arith.constant 2.000000e+00 : f32
    %170 = vector.broadcast %cst_47 : f32 to vector<8x256xf32>
    %171 = arith.subf %170, %169 : vector<8x256xf32>
    %172 = arith.mulf %168, %171 : vector<8x256xf32>
    %173 = arith.mulf %164, %172 : vector<8x256xf32>
    %174 = arith.mulf %165, %172 : vector<8x256xf32>
    %175 = arith.subf %104, %137 : vector<8x256xf32>
    %176 = arith.subf %113, %139 : vector<8x256xf32>
    %cst_48 = arith.constant 1.000000e+00 : f32
    %177 = vector.broadcast %cst_48 : f32 to vector<8x256xf32>
    %178 = arith.subf %177, %141 : vector<8x256xf32>
    %179 = tpu.reciprocal %178 {approx = true} : vector<8x256xf32> -> vector<8x256xf32>
    %180 = arith.mulf %178, %179 : vector<8x256xf32>
    %cst_49 = arith.constant 2.000000e+00 : f32
    %181 = vector.broadcast %cst_49 : f32 to vector<8x256xf32>
    %182 = arith.subf %181, %180 : vector<8x256xf32>
    %183 = arith.mulf %179, %182 : vector<8x256xf32>
    %184 = arith.mulf %175, %183 : vector<8x256xf32>
    %185 = arith.mulf %176, %183 : vector<8x256xf32>
    %186 = arith.subf %61, %151 : vector<8x256xf32>
    %187 = arith.mulf %186, %186 : vector<8x256xf32>
    %188 = arith.subf %62, %152 : vector<8x256xf32>
    %189 = arith.mulf %188, %188 : vector<8x256xf32>
    %190 = arith.addf %187, %189 : vector<8x256xf32>
    %191 = arith.subf %72, %162 : vector<8x256xf32>
    %192 = arith.mulf %191, %191 : vector<8x256xf32>
    %193 = arith.subf %73, %163 : vector<8x256xf32>
    %194 = arith.mulf %193, %193 : vector<8x256xf32>
    %195 = arith.addf %192, %194 : vector<8x256xf32>
    %196 = arith.addf %190, %195 : vector<8x256xf32>
    %197 = arith.subf %83, %173 : vector<8x256xf32>
    %198 = arith.mulf %197, %197 : vector<8x256xf32>
    %199 = arith.subf %84, %174 : vector<8x256xf32>
    %200 = arith.mulf %199, %199 : vector<8x256xf32>
    %201 = arith.addf %198, %200 : vector<8x256xf32>
    %202 = arith.addf %196, %201 : vector<8x256xf32>
    %203 = arith.subf %94, %184 : vector<8x256xf32>
    %204 = arith.mulf %203, %203 : vector<8x256xf32>
    %205 = arith.subf %95, %185 : vector<8x256xf32>
    %206 = arith.mulf %205, %205 : vector<8x256xf32>
    %207 = arith.addf %204, %206 : vector<8x256xf32>
    %208 = arith.addf %202, %207 : vector<8x256xf32>
    %209 = arith.addf %3, %208 : vector<8x256xf32>
    %c1_i32 = arith.constant 1 : i32
    %c0_50 = arith.constant 0 : index
    %c0_51 = arith.constant 0 : index
    %210 = vector.load %arg4[%c0_50, %c0_51] : memref<8x256xf32, #tpu.memory_space<vmem>>, vector<8x256xf32>
    %211 = arith.addf %210, %209 : vector<8x256xf32>
    %c0_52 = arith.constant 0 : index
    %c0_53 = arith.constant 0 : index
    %212 = vector.load %arg4[%c0_52, %c0_53] : memref<8x256xf32, #tpu.memory_space<vmem>>, vector<8x256xf32>
    tpu.vector_store %arg4[%c0_52, %c0_53], %211 {strides = array<i32>} : memref<8x256xf32, #tpu.memory_space<vmem>>, vector<8x256xf32>,
    %c0_i32_54 = arith.constant 0 : i32
    %213 = arith.cmpi eq, %arg1, %c0_i32_54 : i32
    %214 = arith.extui %213 : i1 to i32
    %c0_i32_55 = arith.constant 0 : i32
    %215 = arith.cmpi ne, %214, %c0_i32_55 : i32
    scf.if %215 {
      %c0_56 = arith.constant 0 : index
      %c0_57 = arith.constant 0 : index
      %216 = vector.load %arg4[%c0_56, %c0_57] : memref<8x256xf32, #tpu.memory_space<vmem>>, vector<8x256xf32>
      %217 = vector.extract_strided_slice %216 {offsets = [0, 0], sizes = [8, 128], strides = [1, 1]} : vector<8x256xf32> to vector<8x128xf32>
      %218 = vector.extract_strided_slice %216 {offsets = [0, 128], sizes = [8, 128], strides = [1, 1]} : vector<8x256xf32> to vector<8x128xf32>
      %219 = arith.addf %217, %218 : vector<8x128xf32>
      %c0_58 = arith.constant 0 : index
      %c0_59 = arith.constant 0 : index
      %220 = vector.load %arg3[%c0_58, %c0_59] : memref<8x128xf32, #tpu.memory_space<vmem>>, vector<8x128xf32>
      tpu.vector_store %arg3[%c0_58, %c0_59], %219 {strides = array<i32>} : memref<8x128xf32, #tpu.memory_space<vmem>>, vector<8x128xf32>,
    } else {
    }
    return
  }
  func.func @transform_0(%arg0: i32, %arg1: i32) -> (i32, i32, i32) {
    %c1_i32 = arith.constant 1 : i32
    %0 = arith.muli %arg0, %c1_i32 : i32
    %1 = arith.addi %0, %arg1 : i32
    %c0_i32 = arith.constant 0 : i32
    %c0_i32_0 = arith.constant 0 : i32
    %c0_i32_1 = arith.constant 0 : i32
    return %1, %c0_i32, %c0_i32_0 : i32, i32, i32
  }
  func.func @transform_1(%arg0: i32, %arg1: i32) -> (i32, i32) {
    %c0_i32 = arith.constant 0 : i32
    %c0_i32_0 = arith.constant 0 : i32
    return %arg0, %c0_i32 : i32, i32
  }
}

</mosaic_0001>

<bundles_post_ra>
// kernel: tpu_custom_call.1
= control target key start
LH: loop header
LB: loop body
LE: loop exit
PB: predicated region body
PF: predicated region fallthrough
CT: control target
= control target key end

     0   :  { %6 = vsyncpa [#allocation4], 0  ;;  %s1167_s0 = inlined_call_operand.hbm [shape: f32[2,128,256], index: 0, kind: input, shape index: {}]   ;;  %s1168_s1 = inlined_call_operand.hbm [shape: f32[16,128], index: 1, kind: output, shape index: {}]  }
   0x1   :  { %8 = vsyncpa [#allocation4 + $0x1], 0 }
   0x2   :  { %9 = vsyncpa [#allocation5], 0 }
   0x3   :  { %11 = vsyncpa [#allocation5 + $0x1], 0  ;;  %s784_s6 = smov 0   ;;  %s786_s7 = smov 0  }
   0x4   :  { %s788_s8 = smov 0   ;;  %s790_s9 = smov 0  }
   0x5   :  { %s792_s10 = smov 0   ;;  %s794_s11 = smov 0  }
   0x6 LB: > { %s547_s12 = sadd.s32 4294967295, %s770_s11   ;;  %s548_s13 = sadd.s32 4294967294, %s770_s11   ;;  %s770_s11 = sphi %s794_s11, %s17_s11   ;;  %s766_s10 = sphi %s792_s10, %s1197_s10   ;;  %s762_s9 = sphi %s790_s9, %s1196_s9   ;;  %s758_s8 = sphi %s788_s8, %s1195_s8   ;;  %s754_s7 = sphi %s786_s7, %s1194_s7   ;;  %s750_s6 = sphi %s784_s6, %s1193_s6  }
   0x7   : > { %s29_s14 = sadd.s32 1, %s766_s10  ;;  %s38_s15 = sadd.s32 1, %s758_s8 }
   0x8   : > { %p31_p0 = scmp.ge.s32.totalorder %s29_s14, 2  ;;  %p45_p1 = scmp.ne.s32.totalorder %s758_s8, %s754_s7 }
   0x9   : > { %p46_p2 = scmp.eq.s32.totalorder %s770_s11, 0  ;;  %p51_p3 = scmp.ne.s32.totalorder %s754_s7, %s750_s6 }
   0xa   : > { %s1199_s14 = smov (%p31_p0, %s29_s14), 0  ;;  %p52_p5 = scmp.eq.s32.totalorder %s547_s12, 0 }
   0xb   : > { %p825_p4 = por %p46_p2, %p45_p1  ;;  %s35_s17 = ssub.s32 %s766_s10, %s1199_s14 }
   0xc   : > { %p75_p6 = scmp.eq.s32.totalorder %s547_s12, 1  ;;  %p36_p7 = scmp.eq.s32.totalorder %s35_s17, 0 }
   0xd   : > { %p831_p8 = por %p52_p5, %p51_p3  ;;  %p81_p10 = scmp.eq.s32.totalorder %s548_s13, 1 }
   0xe   : > { %p835_p9 = por %p75_p6, %p45_p1  ;;  %p550_p12 = scmp.ge.s32.totalorder %s770_s11, 2 }
   0xf   : > { %s840_s20 = scalar_select %p36_p7, %s758_s8, %s38_s15  }
  0x10   : > { %p842_p11 = por %p81_p10, %p51_p3  ;;  %p574_p13 = scmp.lt.s32.totalorder %s770_s11, 2 }
  0x11   : > { %s101_s22 = sand.u32 1, %s758_s8   ;;  %s561_s24 = sshll.u32 %s766_s10, 8 }
  0x12   : > { %s551_s23 = sshll.u32 %s101_s22, 8  ;;  %s111_s27 = scalar_lea.hbm %s1167_s0, %s561_s24 }
  0x13   : > { %s105_s28 = scalar_lea.vmem [#allocation3], %s551_s23  ;;  %s112_s30 = sshll.u32 %s111_s27, 4  ;;  %s113_s30 = int_to_ptr.hbm [resolvable:$true] %s112_s30 }
  0x14   : > { %s114_s29 = sshll.u32 %s105_s28, 4  ;;  %p567_p0 = pnand %p574_p13, %p825_p4  ;;  %s115_s29 = int_to_ptr.vmem [resolvable:$true] %s114_s29 }
  0x15   : > { %p554_p1 = scmp.ge.s32.totalorder %s770_s11, 1  ;;  %s102_s2 = scalar_lea.sflag [#allocation4], %s101_s22 }
  0x16   : > { %s772_s3 = smov 256   ;;  %s773_s4 = smov 16  }
  0x17   : > { %569 = dma.hbm_to_vmem [thread:$0]  (!%p567_p0), %s113_s30, 4096, %s115_s29, %s102_s2, %s772_s3, %s772_s3, %s773_s4  }
  0x18   : > { %p122_p2 = scmp.lt.s32.totalorder %s770_s11, 3 }
  0x1a   : > { %p123_p3 = pnand %p554_p1, %p122_p2 }
  0x1c   : > { %126 = sbr.rel (%p123_p3) target bundleno = 110 (0x6e), region = 24 }
  0x21   : > { %s858_s5 = sand.u32 1, %s754_s7  }
  0x22   : > { %s555_s12 = sshll.u32 %s858_s5, 8  ;;  %s129_s13 = scalar_lea.sflag [#allocation4], %s858_s5 }
  0x23   : > { %s862_s15 = scalar_lea.vmem [#allocation3], %s555_s12 }
  0x24   : > { %741 = dma.done.wait (%p831_p8), %s129_s13, 4096  }
  0x25   : > { %743 = vsyncadd (%p831_p8), %s129_s13, 4294963200  ;;  %v159_v0 = vld [vmem:[%s862_s15] sm:$0xff]  ;;  %v160_v1 = vld [vmem:[%s862_s15 + $0x8] sm:$0xff]  ;;  %s556_s16 = sshll.u32 %s858_s5, 3  ;;  %s558_s17 = sshll.u32 %s762_s9, 3 }
  0x26   : > { %v167_v2 = vld [vmem:[%s862_s15 + $0x40] sm:$0xff]  ;;  %v161_v3 = vld [vmem:[%s862_s15 + $0x10] sm:$0xff]  ;;  %v168_v4 = vld [vmem:[%s862_s15 + $0x48] sm:$0xff]  ;;  %v175_v5 = vadd.f32 1.0, %v159_v0  ;;  %v176_v9 = vadd.f32 1.0, %v160_v1  ;;  %s463_s23 = scalar_lea.hbm %s1168_s1, %s558_s17  ;;  %s151_s9 = scalar_lea.vmem [#allocation6], %s556_s16 }
  0x27   : > { %v171_v6 = vld [vmem:[%s862_s15 + $0x60] sm:$0xff]  ;;  %v172_v7 = vld [vmem:[%s862_s15 + $0x68] sm:$0xff]  ;;  %v173_v8 = vld [vmem:[%s862_s15 + $0x70] sm:$0xff]  ;;  %v183_v12 = vadd.f32 1.0, %v167_v2  ;;  %v184_v17 = vadd.f32 1.0, %v168_v4  ;;  %v179_v21 = vmul.f32 8.0, %v161_v3 }
  0x28   : > { %v162_v10 = vld [vmem:[%s862_s15 + $0x18] sm:$0xff]  ;;  %v187_v13 = vmul.f32 8.0, %v171_v6  ;;  %v188_v14 = vmul.f32 8.0, %v172_v7  ;;  %v189_v15 = vmul.f32 8.0, %v173_v8  ;;  %v165_v16 = vld [vmem:[%s862_s15 + $0x30] sm:$0xff]  ;;  %v177_v20 = vmul.f32 8.0, %v175_v5 }
  0x29   : > { %v174_v11 = vld [vmem:[%s862_s15 + $0x78] sm:$0xff]  ;;  %v178_v23 = vmul.f32 8.0, %v176_v9  ;;  %v180_v24 = vmul.f32 8.0, %v162_v10  ;;  %v181_v26 = vmul.f32 8.0, %v165_v16  ;;  %v185_v27 = vmul.f32 8.0, %v183_v12  ;;  %v897_v41 = vld [vmem:[%s862_s15 + $0x20] sm:$0xff] }
  0x2a   : > { %v190_v18 = vmul.f32 8.0, %v174_v11  ;;  %v166_v19 = vld [vmem:[%s862_s15 + $0x38] sm:$0xff]  ;;  %v199_v22 = vadd.f32 %v189_v15, %v187_v13  ;;  %v880_v25 = vsub.f32 %v187_v13, %v189_v15  ;;  %v186_v31 = vmul.f32 8.0, %v184_v17  ;;  %v900_v42 = vld [vmem:[%s862_s15 + $0x28] sm:$0xff]  ;;  %v905_v46 = vld [vmem:[%s862_s15 + $0x50] sm:$0xff]  ;;  %s465_s24 = sshll.u32 %s151_s9, 4  ;;  %s466_s24 = int_to_ptr.vmem [resolvable:$true] %s465_s24 }
  0x2b   : > { %v182_v30 = vmul.f32 8.0, %v166_v19  ;;  %v884_v33 = vadd.f32 %v179_v21, %v177_v20  ;;  %v886_v35 = vadd.f32 %v180_v24, %v178_v23  ;;  %v890_v38 = vsub.f32 %v177_v20, %v179_v21  ;;  %v908_v47 = vld [vmem:[%s862_s15 + $0x58] sm:$0xff]  ;;  %v275_v59 = vld [vmem:[%s862_s15 + $0x80] sm:$0xff]  ;;  %v276_v0 = vld [vmem:[%s862_s15 + $0x88] sm:$0xff]  ;;  %s467_s25 = sshll.u32 %s463_s23, 4  ;;  %s453_s26 = scalar_lea.sflag [#allocation5], %s858_s5  ;;  %s468_s25 = int_to_ptr.hbm [resolvable:$true] %s467_s25 }
  0x2c   : > { %v200_v28 = vadd.f32 %v190_v18, %v188_v14  ;;  %v882_v29 = vsub.f32 %v188_v14, %v190_v18  ;;  %v207_v32 = vsub.f32 1.0, %v199_v22  ;;  %v225_v36 = vadd.f32 1.0, %v880_v25  ;;  %v277_v9 = vld [vmem:[%s862_s15 + $0x90] sm:$0xff]  ;;  %v278_v10 = vld [vmem:[%s862_s15 + $0x98] sm:$0xff]  ;;  %v283_v17 = vld [vmem:[%s862_s15 + $0xc0] sm:$0xff]  ;;  %s702_s27 = sshra.s32 %s468_s25, 4  ;;  %s703_s27 = int_to_ptr.hbm [resolvable:$true] %s702_s27 }
  0x2d   : > { %v892_v39 = vsub.f32 %v178_v23, %v180_v24  ;;  %v894_v40 = vadd.f32 %v185_v27, %v181_v26  ;;  %v902_v43 = vadd.f32 %v186_v31, %v182_v30  ;;  %v243_v44 = vadd.f32 1.0, %v199_v22  ;;  %v281_v16 = vld [vmem:[%s862_s15 + $0xb0] sm:$0xff]  ;;  %v284_v18 = vld [vmem:[%s862_s15 + $0xc8] sm:$0xff]  ;;  %v282_v24 = vld [vmem:[%s862_s15 + $0xb8] sm:$0xff]  ;;  %s704_s28 = scalar_lea.hbm %s703_s27, 8  ;;  %s708_s2 = scalar_lea.hbm %s1168_s1, 16 }
  0x2e   : > { %v208_v34 = vsub.f32 1.0, %v200_v28  ;;  %626 = vrcp.f32 %v207_v32  ;;  %v226_v37 = vadd.f32 1.0, %v882_v29  ;;  %v244_v45 = vadd.f32 1.0, %v200_v28  ;;  %p705_p4 = scmp.ne.s32.totalorder %s703_s27, %s704_s28  ;;  %p709_p7 = scmp.lt.s32.totalorder %s703_s27, %s1168_s1 }
  0x2f   : > { %1176 = vst [vmem:[#allocation9_spill] sm:$0xff] %v892_v39  ;;  %v910_v48 = vsub.f32 %v181_v26, %v185_v27  ;;  %v912_v49 = vsub.f32 %v182_v30, %v186_v31  ;;  %v261_v50 = vsub.f32 1.0, %v880_v25  ;;  %v1169_v51 = vsub.f32 1.0, %v882_v29  ;;  %v287_v26 = vld [vmem:[%s862_s15 + $0xe0] sm:$0xff]  ;;  %v288_v30 = vld [vmem:[%s862_s15 + $0xe8] sm:$0xff]  ;;  %p710_p8 = scmp.lt.s32.totalorder %s708_s2, %s704_s28 }
  0x30   : > { %628 = vrcp.f32 %v208_v34  ;;  %v926_v57 = vadd.f32 %v890_v38, %v897_v41  ;;  %v930_v58 = vadd.f32 %v892_v39, %v900_v42  ;;  %v946_v3 = vadd.f32 %v884_v33, %v897_v41  ;;  %p706_p5 = pnand %p705_p4, %p835_p9 }
  0x31   : > { %630 = vrcp.f32 %v225_v36  ;;  %1177 = vst [vmem:[#allocation10_spill] sm:$0xff] %v912_v49  ;;  %v935_v62 = vadd.f32 %v910_v48, %v905_v46  ;;  %v939_v63 = vadd.f32 %v912_v49, %v908_v47  ;;  %v950_v4 = vadd.f32 %v886_v35, %v900_v42  ;;  %p711_p10 = por %p710_p8, %p709_p7 }
  0x32   : > { %632 = vrcp.f32 %v226_v37  ;;  %v956_v6 = vadd.f32 %v894_v40, %v905_v46  ;;  %v960_v7 = vadd.f32 %v902_v43, %v908_v47  ;;  %v291_v11 = vadd.f32 1.0, %v275_v59  ;;  %p707_p6 = pneg %p706_p5 }
  0x33   : > { %634 = vrcp.f32 %v243_v44  ;;  %v292_v19 = vadd.f32 1.0, %v276_v0  ;;  %v295_v31 = vmul.f32 8.0, %v277_v9  ;;  %v297_v0 = vmul.f32 8.0, %v281_v16 }
  0x34   : > { %636 = vrcp.f32 %v244_v45  ;;  %v627_v54 = vpop.eup %626  ;;  %v293_v59 = vmul.f32 8.0, %v291_v11  ;;  %v303_v55 = vmul.f32 8.0, %v287_v26  ;;  %v304_v28 = vmul.f32 8.0, %v288_v30  ;;  %p712_p13 = pnand %p711_p10, %p707_p6 }
  0x35   : > { %v211_v61 = vmul.f32 %v627_v54, %v207_v32  ;;  %638 = vrcp.f32 %v261_v50  ;;  %v296_v32 = vmul.f32 8.0, %v278_v10  ;;  %v294_v56 = vmul.f32 8.0, %v292_v19 }
  0x36   : > { %v629_v60 = vpop.eup %628  ;;  %640 = vrcp.f32 %v1169_v51  ;;  %v1178_v11 = vsub.f32 1.0, %v882_v29  ;;  %v984_v19 = vadd.f32 %v295_v31, %v293_v59  ;;  %v1180_v25 = vsub.f32 %v900_v42, %v886_v35 }
  0x37   : > { %v631_v1 = vpop.eup %630  ;;  %v212_v2 = vmul.f32 %v629_v60, %v208_v34  ;;  %v213_v21 = vsub.f32 2.0, %v211_v61  ;;  %v299_v61 = vadd.f32 1.0, %v283_v17  ;;  %v298_v17 = vmul.f32 8.0, %v282_v24 }
  0x38   : > { %v633_v5 = vpop.eup %632  ;;  %v229_v13 = vmul.f32 %v631_v1, %v225_v36  ;;  %v289_v36 = vld [vmem:[%s862_s15 + $0xf0] sm:$0xff]  ;;  %v1181_v29 = vsub.f32 %v905_v46, %v894_v40 }
  0x39   : > { %v635_v12 = vpop.eup %634  ;;  %v230_v14 = vmul.f32 %v633_v5, %v226_v37  ;;  %v214_v22 = vsub.f32 2.0, %v212_v2  ;;  %v290_v37 = vld [vmem:[%s862_s15 + $0xf8] sm:$0xff]  ;;  %v300_v2 = vadd.f32 1.0, %v284_v18  ;;  %v305_v10 = vmul.f32 8.0, %v289_v36 }
  0x3a   : > { %v637_v20 = vpop.eup %636  ;;  %v247_v23 = vmul.f32 %v635_v12, %v243_v44  ;;  %v231_v15 = vsub.f32 2.0, %v229_v13  ;;  %v306_v49 = vmul.f32 8.0, %v290_v37  ;;  %v301_v18 = vmul.f32 8.0, %v299_v61  ;;  %v1063_v61 = vld [vmem:[%s862_s15 + $0xd0] sm:$0xff] }
  0x3b   : > { %v248_v27 = vmul.f32 %v637_v20, %v244_v45  ;;  %v639_v34 = vpop.eup %638  ;;  %v232_v8 = vsub.f32 2.0, %v230_v14  ;;  %v215_v45 = vmul.f32 %v627_v54, %v213_v21  ;;  %v216_v53 = vmul.f32 %v629_v60, %v214_v22 }
  0x3c   : > { %v641_v44 = vpop.eup %640  ;;  %v249_v52 = vsub.f32 2.0, %v247_v23  ;;  %v265_v9 = vmul.f32 %v639_v34, %v261_v50  ;;  %v302_v13 = vmul.f32 8.0, %v300_v2  ;;  %v233_v14 = vmul.f32 %v631_v1, %v231_v15  ;;  %v1066_v2 = vld [vmem:[%s862_s15 + $0xd8] sm:$0xff] }
  0x3d   : > { %v250_v51 = vsub.f32 2.0, %v248_v27  ;;  %v266_v16 = vmul.f32 %v641_v44, %v1178_v11  ;;  %v234_v39 = vmul.f32 %v633_v5, %v232_v8  ;;  %v986_v54 = vadd.f32 %v296_v32, %v294_v56 }
  0x3e   : > { %v1179_v60 = vsub.f32 %v897_v41, %v884_v33  ;;  %v996_v50 = vmul.f32 %v216_v53, %v1180_v25  ;;  %v1001_v22 = vmul.f32 %v215_v45, %v1181_v29  ;;  %v251_v1 = vmul.f32 %v635_v12, %v249_v52 }
  0x3f   : > { %v252_v5 = vmul.f32 %v637_v20, %v250_v51  ;;  %v267_v8 = vsub.f32 2.0, %v265_v9  ;;  %v315_v15 = vadd.f32 %v305_v10, %v303_v55  ;;  %v316_v23 = vadd.f32 %v306_v49, %v304_v28 }
  0x40   : > { %v991_v21 = vmul.f32 %v215_v45, %v1179_v60  ;;  %v1182_v33 = vsub.f32 %v908_v47, %v902_v43  ;;  %v268_v26 = vsub.f32 2.0, %v266_v16  ;;  %v1008_v27 = vsub.f32 %v303_v55, %v305_v10 }
  0x41   : > { %v1010_v35 = vsub.f32 %v304_v28, %v306_v49  ;;  %v1013_v30 = vmul.f32 %v233_v14, %v926_v57  ;;  %v1016_v40 = vmul.f32 %v234_v39, %v930_v58  ;;  %v1019_v51 = vmul.f32 %v233_v14, %v935_v62 }
  0x42   : > { %v1006_v24 = vmul.f32 %v216_v53, %v1182_v33  ;;  %v1022_v52 = vmul.f32 %v234_v39, %v939_v63  ;;  %v1025_v43 = vmul.f32 %v251_v1, %v946_v3  ;;  %v1028_v53 = vmul.f32 %v251_v1, %v956_v6 }
  0x43   : > { %v323_v49 = vsub.f32 1.0, %v315_v15  ;;  %v324_v55 = vsub.f32 1.0, %v316_v23  ;;  %v1031_v57 = vmul.f32 %v252_v5, %v950_v4  ;;  %v1034_v58 = vmul.f32 %v252_v5, %v960_v7  ;;  %v1045_v4 = vld [vmem:[%s862_s15 + $0xa0] sm:$0xff]  ;;  %v1048_v7 = vld [vmem:[%s862_s15 + $0xa8] sm:$0xff] }
  0x44   : > { %v269_v62 = vmul.f32 %v639_v34, %v267_v8  ;;  %v1036_v12 = vsub.f32 %v293_v59, %v295_v31  ;;  %v270_v39 = vmul.f32 %v641_v44, %v268_v26  ;;  %v341_v63 = vadd.f32 1.0, %v1008_v27 }
  0x45   : > { %642 = vrcp.f32 %v323_v49  ;;  %v342_v3 = vadd.f32 1.0, %v1010_v35  ;;  %v1040_v6 = vsub.f32 %v294_v56, %v296_v32  ;;  %v311_v20 = vadd.f32 %v301_v18, %v297_v0 }
  0x46   : > { %v1042_v28 = vadd.f32 %v302_v13, %v298_v17  ;;  %644 = vrcp.f32 %v324_v55  ;;  %v1050_v31 = vsub.f32 %v297_v0, %v301_v18  ;;  %v359_v34 = vadd.f32 1.0, %v315_v15  ;;  %v1186_v0 = vld [vmem:[#allocation9_spill] sm:$0xff] }
  0x47   : > { %646 = vrcp.f32 %v341_v63  ;;  %v360_v36 = vadd.f32 1.0, %v316_v23  ;;  %v1183_v37 = vsub.f32 %v897_v41, %v890_v38  ;;  %v1184_v56 = vsub.f32 %v905_v46, %v910_v48  ;;  %v1188_v46 = vld [vmem:[#allocation10_spill] sm:$0xff] }
  0x48   : > { %v1068_v44 = vsub.f32 %v298_v17, %v302_v13  ;;  %648 = vrcp.f32 %v342_v3  ;;  %v1187_v45 = vsub.f32 %v900_v42, %v1186_v0  ;;  %v377_v38 = vsub.f32 1.0, %v1008_v27 }
  0x49   : > { %v1055_v59 = vmul.f32 %v269_v62, %v1183_v37  ;;  %v1060_v32 = vmul.f32 %v269_v62, %v1184_v56  ;;  %650 = vrcp.f32 %v359_v34  ;;  %v378_v41 = vsub.f32 1.0, %v1010_v35 }
  0x4a   : > { %v1073_v9 = vmul.f32 %v270_v39, %v1187_v45  ;;  %v1189_v48 = vsub.f32 %v908_v47, %v1188_v46  ;;  %v319_v11 = vsub.f32 %v1045_v4, %v984_v19  ;;  %v320_v16 = vsub.f32 %v1048_v7, %v986_v54 }
  0x4b   : > { %1185 = vst [vmem:[#allocation11_spill] sm:$0xff] %v1060_v32  ;;  %652 = vrcp.f32 %v360_v36  ;;  %v643_v42 = vpop.eup %642  ;;  %v321_v17 = vsub.f32 %v1063_v61, %v311_v20  ;;  %v322_v18 = vsub.f32 %v1066_v2, %v1042_v28  ;;  %v337_v13 = vadd.f32 %v1036_v12, %v1045_v4 }
  0x4c   : > { %v1080_v10 = vmul.f32 %v270_v39, %v1189_v48  ;;  %654 = vrcp.f32 %v377_v38  ;;  %v645_v47 = vpop.eup %644  ;;  %v327_v14 = vmul.f32 %v643_v42, %v323_v49  ;;  %v338_v60 = vadd.f32 %v1040_v6, %v1048_v7 }
  0x4d   : > { %v339_v25 = vadd.f32 %v1050_v31, %v1063_v61  ;;  %656 = vrcp.f32 %v378_v41  ;;  %v647_v29 = vpop.eup %646  ;;  %v328_v1 = vmul.f32 %v645_v47, %v324_v55  ;;  %v340_v5 = vadd.f32 %v1068_v44, %v1066_v2 }
  0x4e   : > { %1190 = vst [vmem:[#allocation9_spill] sm:$0xff] %v1080_v10  ;;  %v355_v8 = vadd.f32 %v984_v19, %v1045_v4  ;;  %v356_v15 = vadd.f32 %v986_v54, %v1048_v7  ;;  %v649_v23 = vpop.eup %648  ;;  %v329_v33 = vsub.f32 2.0, %v327_v14  ;;  %v345_v26 = vmul.f32 %v647_v29, %v341_v63 }
  0x4f   : > { %v357_v27 = vadd.f32 %v311_v20, %v1063_v61  ;;  %v358_v35 = vadd.f32 %v1042_v28, %v1066_v2  ;;  %v651_v49 = vpop.eup %650  ;;  %v330_v62 = vsub.f32 2.0, %v328_v1  ;;  %v346_v55 = vmul.f32 %v649_v23, %v342_v3 }
  0x50   : > { %v373_v39 = vsub.f32 %v1045_v4, %v1036_v12  ;;  %v374_v19 = vsub.f32 %v1048_v7, %v1040_v6  ;;  %v331_v56 = vmul.f32 %v643_v42, %v329_v33  ;;  %v347_v54 = vsub.f32 2.0, %v345_v26 }
  0x51   : > { %v653_v37 = vpop.eup %652  ;;  %v363_v0 = vmul.f32 %v651_v49, %v359_v34  ;;  %v375_v63 = vsub.f32 %v1063_v61, %v1050_v31  ;;  %v332_v45 = vmul.f32 %v645_v47, %v330_v62  ;;  %v348_v46 = vsub.f32 2.0, %v346_v55 }
  0x52   : > { %v655_v20 = vpop.eup %654  ;;  %v364_v28 = vmul.f32 %v653_v37, %v360_v36  ;;  %v376_v3 = vsub.f32 %v1066_v2, %v1068_v44  ;;  %v333_v14 = vmul.f32 %v331_v56, %v319_v11  ;;  %v335_v12 = vmul.f32 %v331_v56, %v321_v17 }
  0x53   : > { %v657_v48 = vpop.eup %656  ;;  %v349_v4 = vmul.f32 %v647_v29, %v347_v54  ;;  %v365_v1 = vsub.f32 2.0, %v363_v0  ;;  %v334_v6 = vmul.f32 %v332_v45, %v320_v16  ;;  %v336_v7 = vmul.f32 %v332_v45, %v322_v18 }
  0x54   : > { %v350_v42 = vmul.f32 %v649_v23, %v348_v46  ;;  %v366_v33 = vsub.f32 2.0, %v364_v28  ;;  %v381_v31 = vmul.f32 %v655_v20, %v377_v38  ;;  %v382_v36 = vmul.f32 %v657_v48, %v378_v41 }
  0x55   : > { %v351_v34 = vmul.f32 %v349_v4, %v337_v13  ;;  %v353_v26 = vmul.f32 %v349_v4, %v339_v25  ;;  %v367_v10 = vmul.f32 %v651_v49, %v365_v1  ;;  %v391_v44 = vsub.f32 %v991_v21, %v333_v14  ;;  %v1192_v14 = vld [vmem:[#allocation9_spill] sm:$0xff] }
  0x56   : > { %v352_v61 = vmul.f32 %v350_v42, %v338_v60  ;;  %v354_v47 = vmul.f32 %v350_v42, %v340_v5  ;;  %v368_v62 = vmul.f32 %v653_v37, %v366_v33  ;;  %v383_v2 = vsub.f32 2.0, %v381_v31 }
  0x57   : > { %v369_v55 = vmul.f32 %v367_v10, %v355_v8  ;;  %v371_v32 = vmul.f32 %v367_v10, %v357_v27  ;;  %v384_v29 = vsub.f32 2.0, %v382_v36  ;;  %v392_v16 = vsub.f32 %v996_v50, %v334_v6 }
  0x58   : > { %v370_v11 = vmul.f32 %v368_v62, %v356_v15  ;;  %v372_v17 = vmul.f32 %v368_v62, %v358_v35  ;;  %v385_v18 = vmul.f32 %v655_v20, %v383_v2  ;;  %v393_v23 = vmul.f32 %v391_v44, %v391_v44 }
  0x59   : > { %v395_v13 = vsub.f32 %v1001_v22, %v335_v12  ;;  %v396_v38 = vsub.f32 %v1006_v24, %v336_v7  ;;  %v386_v60 = vmul.f32 %v657_v48, %v384_v29  ;;  %v394_v25 = vmul.f32 %v392_v16, %v392_v16 }
  0x5a   : > { %v401_v41 = vsub.f32 %v1013_v30, %v351_v34  ;;  %v402_v10 = vsub.f32 %v1016_v40, %v352_v61  ;;  %v387_v5 = vmul.f32 %v385_v18, %v373_v39  ;;  %v389_v8 = vmul.f32 %v385_v18, %v375_v63 }
  0x5b   : > { %v397_v21 = vmul.f32 %v395_v13, %v395_v13  ;;  %v398_v15 = vmul.f32 %v396_v38, %v396_v38  ;;  %v388_v27 = vmul.f32 %v386_v60, %v374_v19  ;;  %v390_v35 = vmul.f32 %v386_v60, %v376_v3 }
  0x5c   : > { %v403_v49 = vmul.f32 %v401_v41, %v401_v41  ;;  %v404_v50 = vmul.f32 %v402_v10, %v402_v10  ;;  %v405_v22 = vsub.f32 %v1019_v51, %v353_v26  ;;  %v406_v24 = vsub.f32 %v1022_v52, %v354_v47 }
  0x5d   : > { %v399_v37 = vadd.f32 %v397_v21, %v393_v23  ;;  %v400_v56 = vadd.f32 %v398_v15, %v394_v25  ;;  %v413_v54 = vsub.f32 %v1025_v43, %v369_v55  ;;  %v414_v30 = vsub.f32 %v1031_v57, %v370_v11 }
  0x5e   : > { %v417_v40 = vsub.f32 %v1028_v53, %v371_v32  ;;  %v418_v39 = vsub.f32 %v1034_v58, %v372_v17  ;;  %v407_v19 = vmul.f32 %v405_v22, %v405_v22  ;;  %v408_v0 = vmul.f32 %v406_v24, %v406_v24  ;;  %v1191_v32 = vld [vmem:[#allocation11_spill] sm:$0xff] }
  0x5f   : > { %v425_v63 = vsub.f32 %v1055_v59, %v387_v5  ;;  %v426_v20 = vsub.f32 %v1073_v9, %v388_v27  ;;  %v415_v45 = vmul.f32 %v413_v54, %v413_v54  ;;  %v416_v46 = vmul.f32 %v414_v30, %v414_v30 }
  0x60   : > { %v419_v51 = vmul.f32 %v417_v40, %v417_v40  ;;  %v420_v28 = vmul.f32 %v418_v39, %v418_v39  ;;  %v409_v52 = vadd.f32 %v407_v19, %v403_v49  ;;  %v410_v43 = vadd.f32 %v408_v0, %v404_v50 }
  0x61   : > { %v427_v3 = vmul.f32 %v425_v63, %v425_v63  ;;  %v428_v57 = vmul.f32 %v426_v20, %v426_v20  ;;  %v429_v58 = vsub.f32 %v1191_v32, %v389_v8  ;;  %v430_v12 = vsub.f32 %v1192_v14, %v390_v35 }
  0x62   : > { %v421_v48 = vadd.f32 %v419_v51, %v415_v45  ;;  %v422_v53 = vadd.f32 %v420_v28, %v416_v46  ;;  %v411_v4 = vadd.f32 %v409_v52, %v399_v37  ;;  %v412_v59 = vadd.f32 %v410_v43, %v400_v56 }
  0x63   : > { %v431_v1 = vmul.f32 %v429_v58, %v429_v58  ;;  %v432_v9 = vmul.f32 %v430_v12, %v430_v12 }
  0x64   : > { %v423_v6 = vadd.f32 %v421_v48, %v411_v4  ;;  %v424_v7 = vadd.f32 %v422_v53, %v412_v59 }
  0x65   : > { %v433_v42 = vadd.f32 %v431_v1, %v427_v3  ;;  %v434_v33 = vadd.f32 %v432_v9, %v428_v57 }
  0x67   : > { %v435_v34 = vadd.f32 %v433_v42, %v423_v6  ;;  %v436_v26 = vadd.f32 %v434_v33, %v424_v7 }
  0x69   : > { %v450_v31 = vadd.f32 %v436_v26, %v435_v34 }
  0x6b   : > { %451 = vst [vmem:[%s151_s9] sm:$0xff] %v450_v31 }
  0x6c   : > { %715 = shalt.err (!%p712_p13)
}
  0x6d   : > { %564 = dma.vmem_to_hbm [thread:$0]  (%p835_p9), %s466_s24, 128, %s468_s25, %s453_s26  }
  0x6e PF: > { %s479_s5 = sand.u32 1, %s750_s6   ;;  %p571_p0 = pnand %p550_p12, %p842_p11 }
  0x6f   : > { %s480_s12 = scalar_lea.sflag [#allocation5], %s479_s5 }
  0x70   : > { %p572_p1 = pneg %p571_p0 }
  0x72   : > { %745 = dma.done.wait (%p572_p1), %s480_s12, 128  }
  0x73   : > { %747 = vsyncadd (%p572_p1), %s480_s12, 4294967168  ;;  %s17_s11 = sadd.s32 1, %s770_s11   ;;  %s1193_s6 = smov %s754_s7 }
  0x74   : > { %p14_p2 = scmp.ge.s32.totalorder %s17_s11, 4   ;;  %s1194_s7 = smov %s758_s8 }
  0x75   : > { %s1195_s8 = smov %s840_s20  ;;  %s1196_s9 = smov %s766_s10 }
  0x76   : > { %s1197_s10 = smov %s1199_s14  ;;  %16 = sbr.rel (!%p14_p2) target bundleno = 6 (0x6), region = 77 }
  0x7b   :  { %486 = vsyncpa [#allocation4], 1 }
  0x7c   :  { %488 = vsyncpa [#allocation4 + $0x1], 1 }
  0x7d   :  { %489 = vsyncpa [#allocation5], 1 }
  0x7e   :  { %491 = vsyncpa [#allocation5 + $0x1], 1 }

</bundles_post_ra>
